<compile_context>
chip_gen: v7x
topology: tpu7x:2x2x1
jax: 0.10.0
libtpu: 0.0.40
codegen_flags: <defaults>
</compile_context>

<pallas_src>
import functools
import math

import jax
import jax.numpy as jnp
from jax.experimental import pallas as pl
from jax.experimental.pallas import tpu as pltpu


def _round_up(v, m):
    return ((v + m - 1) // m) * m


def _round_down(v, m):
    return (v // m) * m


def _sublane_pack(dtype):
    # Minimal TPU tile rows: 8 for 4-byte, 16 for 2-byte, 32 for 1-byte dtypes.
    return max(8, 32 // jnp.dtype(dtype).itemsize)


def _physical_vmem_bytes():
    try:
        info = pltpu.get_tpu_info()
        for name in ("vmem_capacity_bytes", "vmem_size_bytes", "vmem_bytes"):
            v = getattr(info, name, None)
            if v:
                return int(v)
    except Exception:
        pass
    return 64 << 20  # conservative default (v7x physical VMEM)


def rope_kernel(pos_ref, invf_ref, x_ref, o_ref, *, rep):
    # pos_ref:  (tile_t, 1)   f32 -- positions (already rescaled by stride/kernel in wrapper)
    # invf_ref: (1, L)        f32 -- pairwise-repeated inv_freq with the interleave sign
    #                                folded in (invf[2i] = -inv_freq[i], invf[2i+1] = +inv_freq[i])
    # x_ref:    (tile_t, rep*L)    -- heads flattened into lanes (lane-dense loads/stores)
    ang = pos_ref[...] * invf_ref[...]                    # (tT, L)
    cos = jnp.cos(ang)                                    # cos is even -> sign fold is a no-op
    sin = jnp.sin(ang)                                    # interleave sign already folded in
    L = invf_ref.shape[-1]
    lane = jax.lax.broadcasted_iota(jnp.int32, (1, L), 1)
    even = (lane % 2) == 0

    # Static unroll over 128-aligned L-wide lane slices; cos/sin are reused across slices,
    # so EUP work is done once per rotary pair, not once per head.
    for r in range(rep):
        sl = pl.ds(r * L, L)
        x = x_ref[:, sl].astype(jnp.float32)
        # Pair swap: even lane j takes x[j+1], odd lane j takes x[j-1] (XLU roll + one select).
        # D is even, so the swap never crosses a pair boundary; wrap-around lanes never selected.
        x_swap = jnp.where(even,
                           pltpu.roll(x, shift=L - 1, axis=1),
                           pltpu.roll(x, shift=1, axis=1))
        # TODO(synk): on v6e/v7x a bf16 multiply-add (cast cos/sin down once) would halve vreg
        # pressure; kept in f32 here for numerics parity across generations (v5e has no bf16 VPU).
        o_ref[:, sl] = (x * cos + x_swap * sin).astype(o_ref.dtype)


def rope_pallas(x, positions, *, dim, base=10000.0, kernel_size=None, stride=None,
                tile_t=512):
    """Interleaved RoPE forward. x: [T, H, D]; positions: [T] (int or float)."""
    T, H, D = x.shape
    assert D == dim and D % 2 == 0
    HD = H * D
    itemsize = jnp.dtype(x.dtype).itemsize
    pack = _sublane_pack(x.dtype)

    pos = positions.astype(jnp.float32)
    # TODO(synk): positions >= 2^24 lose integer precision in f32 (very long context).
    if kernel_size is not None and stride is not None:
        pos = pos * float(stride) + (kernel_size - 1) / 2.0
    pos2d = pos.reshape(T, 1)

    # Signed, pairwise-repeated inv_freq: invf[2i] = -inv_freq[i], invf[2i+1] = +inv_freq[i].
    inv_freq = 1.0 / (base ** (jnp.arange(0, D, 2, dtype=jnp.float32) / D))   # (D/2,)
    invf_pair = jnp.repeat(inv_freq, 2)                                       # (D,)
    sign = jnp.where(jnp.arange(D) % 2 == 0, -1.0, 1.0).astype(jnp.float32)
    invf_signed = invf_pair * sign                                            # (D,)

    # ---- generation-aware VMEM budget ------------------------------------------------
    phys_vmem = _physical_vmem_bytes()                 # 128 MiB v5e/v6e, 64 MiB v7x
    vmem_limit = min((phys_vmem * 3) // 4, 112 << 20)  # ~96 MiB v6e, ~48 MiB v7x
    budget = vmem_limit // 2                           # 2x headroom over footprint estimate

    # ---- choose lane (head-block) width and transcendental slab width L ---------------
    target_rows = max(pack, _round_down(max(int(tile_t), pack), pack))

    def layout_for(num_hb):
        bl = HD // num_hb
        L = (D * 128) // math.gcd(D, 128)              # lcm(D, 128)
        if bl % L != 0:
            L = bl                                     # fallback: no cos/sin reuse possible
        # dbl-buffered in+out tiles + f32 kernel temporaries + padded pos block, per row.
        per_row = 4 * bl * itemsize + 32 * L + 1024
        rows_cap = max(pack, _round_down(budget // per_row, pack))
        return bl, L, rows_cap

    num_hb = 1
    bl, L, rows_cap = layout_for(1)
    if rows_cap < min(target_rows, _round_up(T, pack)):
        # Wide H*D: split lanes over 128-aligned head blocks instead of shrinking row tiles.
        for nb in range(2, H + 1):
            if H % nb or (HD // nb) % 128 != 0:
                continue
            cand = layout_for(nb)
            if cand[2] > rows_cap:
                num_hb, (bl, L, rows_cap) = nb, cand
            if cand[2] >= min(target_rows, _round_up(T, pack)):
                break

    rep = bl // L
    invf_arr = jnp.tile(invf_signed, L // D).reshape(1, L)

    # ---- row tile: as large as the budget allows, no wrapper-side padding/slicing ------
    if T <= target_rows and T <= rows_cap:
        tt = T                                         # full-extent block: no pack constraint
    else:
        tt = max(pack, min(target_rows, rows_cap))     # multiple of pack; ragged last block OK

    grid = (pl.cdiv(T, tt), num_hb)

    cost = pl.CostEstimate(
        flops=6 * T * HD,
        transcendentals=2 * T * L * num_hb,
        bytes_accessed=2 * T * HD * itemsize + T * 4 + L * 4,
    )

    x_flat = x.reshape(T, HD)                          # free reshape (contiguous)
    out_flat = pl.pallas_call(
        functools.partial(rope_kernel, rep=rep),
        out_shape=jax.ShapeDtypeStruct((T, HD), x.dtype),
        grid_spec=pltpu.PrefetchScalarGridSpec(
            num_scalar_prefetch=0,
            grid=grid,
            in_specs=[
                pl.BlockSpec((tt, 1), lambda i, j: (i, 0)),      # positions
                pl.BlockSpec((1, L), lambda i, j: (0, 0)),       # signed inv_freq slab
                pl.BlockSpec((tt, bl), lambda i, j: (i, j)),     # x (flattened heads)
            ],
            out_specs=pl.BlockSpec((tt, bl), lambda i, j: (i, j)),
        ),
        compiler_params=pltpu.CompilerParams(
            dimension_semantics=("parallel", "parallel"),
            vmem_limit_bytes=int(vmem_limit),
        ),
        cost_estimate=cost,
    )(pos2d, invf_arr, x_flat)

    return out_flat.reshape(T, H, D)


def rope_reference(x, positions, *, dim, base=10000.0, kernel_size=None, stride=None):
    """Pure-JAX port of RotaryPositionalEmbeddings.eager_forward (interleaved)."""
    pos = positions.astype(jnp.float32)
    if kernel_size is not None and stride is not None:
        pos = pos * float(stride) + (kernel_size - 1) / 2.0
    inv_freq = 1.0 / (base ** (jnp.arange(0, dim, 2, dtype=jnp.float32) / dim))
    ang = pos[:, None] * inv_freq[None, :]            # (T, D/2)
    cos = jnp.cos(ang)[:, None, :]                    # (T, 1, D/2)
    sin = jnp.sin(ang)[:, None, :]
    xs = x.reshape(*x.shape[:-1], dim // 2, 2).astype(jnp.float32)
    x0, x1 = xs[..., 0], xs[..., 1]
    out = jnp.stack([x0 * cos - x1 * sin, x1 * cos + x0 * sin], axis=-1)
    return out.reshape(x.shape).astype(x.dtype)


if __name__ == "__main__":
    key = jax.random.PRNGKey(0)

    # --- Test 1: f32, small rotary dim, H*D = 128 lanes -------------------------------
    T, H, D = 16, 4, 32
    x = jax.random.normal(key, (T, H, D), dtype=jnp.float32)
    positions = jnp.arange(T, dtype=jnp.int32)        # packed_meta_data.position_idcs

    out = jax.block_until_ready(rope_pallas(x, positions, dim=D))
    ref = rope_reference(x, positions, dim=D)
    assert out.shape == x.shape and out.dtype == x.dtype
    assert jnp.allclose(out, ref, atol=1e-4, rtol=1e-4)

    # With kernel_size / stride position rescaling (pooled-position variant)
    out2 = jax.block_until_ready(rope_pallas(x, positions, dim=D, kernel_size=3, stride=2))
    ref2 = rope_reference(x, positions, dim=D, kernel_size=3, stride=2)
    assert jnp.allclose(out2, ref2, atol=1e-4, rtol=1e-4)

    # --- Test 2: bf16 I/O, D=128 (cos/sin slab reused across heads), T=20 full block ---
    T2, H2, D2 = 20, 2, 128
    xb = jax.random.normal(jax.random.PRNGKey(0), (T2, H2, D2),
                           dtype=jnp.float32).astype(jnp.bfloat16)
    pos2 = jnp.arange(T2, dtype=jnp.int32)
    out3 = jax.block_until_ready(rope_pallas(xb, pos2, dim=D2))
    ref3 = rope_reference(xb, pos2, dim=D2)
    assert out3.shape == xb.shape and out3.dtype == xb.dtype
    assert jnp.allclose(out3.astype(jnp.float32), ref3.astype(jnp.float32),
                        atol=3e-2, rtol=3e-2)

    # --- Test 3: f32, D=64, T not divisible by the row tile (ragged last grid block,
    #             no wrapper padding/slicing) ------------------------------------------
    T3, H3, D3 = 20, 2, 64
    xc = jax.random.normal(jax.random.PRNGKey(1), (T3, H3, D3), dtype=jnp.float32)
    pos3 = jnp.arange(T3, dtype=jnp.int32)
    out4 = jax.block_until_ready(rope_pallas(xc, pos3, dim=D3, tile_t=8))
    ref4 = rope_reference(xc, pos3, dim=D3)
    assert jnp.allclose(out4, ref4, atol=1e-4, rtol=1e-4)

    # --- Test 4: bf16, D=64 with many heads (cos/sin computed once per 128-lane slab,
    #             reused rep=4 times) ---------------------------------------------------
    T4, H4, D4 = 40, 8, 64
    xd = jax.random.normal(jax.random.PRNGKey(2), (T4, H4, D4),
                           dtype=jnp.float32).astype(jnp.bfloat16)
    pos4 = jnp.arange(T4, dtype=jnp.int32)
    out5 = jax.block_until_ready(rope_pallas(xd, pos4, dim=D4))
    ref5 = rope_reference(xd, pos4, dim=D4)
    assert jnp.allclose(out5.astype(jnp.float32), ref5.astype(jnp.float32),
                        atol=3e-2, rtol=3e-2)

    print("KERNEL_OK")
</pallas_src>

<mosaic_0001>
module attributes {stable_mosaic.version = 11 : i64} {
  func.func @rope_kernel(%arg0: i32, %arg1: i32, %arg2: memref<16x1xf32, #tpu.memory_space<vmem>>, %arg3: memref<1x128xf32, #tpu.memory_space<vmem>>, %arg4: memref<16x128xf32, #tpu.memory_space<vmem>>, %arg5: memref<16x128xf32, #tpu.memory_space<vmem>>) attributes {dimension_semantics = [#tpu.dimension_semantics<parallel>, #tpu.dimension_semantics<parallel>], iteration_bounds = array<i64: 1, 1>, scalar_prefetch = 0 : i64, scratch_operands = 0 : i64, tpu.core_type = #tpu.core_type<tc>, window_params = [{transform_indices = @transform_0, window_bounds = array<i64: 16, 1>}, {pipeline_mode = #tpu.pipeline_mode<synchronous>, transform_indices = @transform_1, window_bounds = array<i64: 1, 128>}, {transform_indices = @transform_2, window_bounds = array<i64: 16, 128>}, {transform_indices = @transform_3, window_bounds = array<i64: 16, 128>}]} {
    %c0 = arith.constant 0 : index
    %c0_0 = arith.constant 0 : index
    %0 = vector.load %arg2[%c0, %c0_0] : memref<16x1xf32, #tpu.memory_space<vmem>>, vector<16x1xf32>
    %c0_1 = arith.constant 0 : index
    %c0_2 = arith.constant 0 : index
    %1 = vector.load %arg3[%c0_1, %c0_2] : memref<1x128xf32, #tpu.memory_space<vmem>>, vector<1x128xf32>
    %2 = vector.broadcast %0 : vector<16x1xf32> to vector<16x128xf32>
    %3 = vector.broadcast %1 : vector<1x128xf32> to vector<16x128xf32>
    %4 = arith.mulf %2, %3 : vector<16x128xf32>
    %5 = math.cos %4 : vector<16x128xf32>
    %6 = math.sin %4 : vector<16x128xf32>
    %7 = tpu.iota {dimensions = array<i32: 1>} : vector<1x128xi32>
    %c2_i32 = arith.constant 2 : i32
    %c0_i32 = arith.constant 0 : i32
    %8 = arith.cmpi eq, %c2_i32, %c0_i32 : i32
    %c1_i32 = arith.constant 1 : i32
    %9 = arith.select %8, %c1_i32, %c2_i32 : i32
    %10 = vector.broadcast %9 : i32 to vector<1x128xi32>
    %11 = arith.remsi %7, %10 : vector<1x128xi32>
    %c0_i32_3 = arith.constant 0 : i32
    %12 = vector.broadcast %c0_i32_3 : i32 to vector<1x128xi32>
    %13 = arith.cmpi ne, %11, %12 : vector<1x128xi32>
    %c0_i32_4 = arith.constant 0 : i32
    %14 = vector.broadcast %c0_i32_4 : i32 to vector<1x128xi32>
    %15 = arith.cmpi slt, %11, %14 : vector<1x128xi32>
    %c0_i32_5 = arith.constant 0 : i32
    %16 = arith.cmpi slt, %9, %c0_i32_5 : i32
    %17 = vector.broadcast %16 : i1 to vector<1x128xi1>
    %18 = vector.broadcast %17 : vector<1x128xi1> to vector<1x128xi1>
    %19 = arith.xori %15, %18 : vector<1x128xi1>
    %20 = arith.andi %19, %13 : vector<1x128xi1>
    %21 = vector.broadcast %9 : i32 to vector<1x128xi32>
    %22 = arith.addi %11, %21 : vector<1x128xi32>
    %23 = arith.select %20, %22, %11 : vector<1x128xi1>, vector<1x128xi32>
    %c0_i32_6 = arith.constant 0 : i32
    %24 = vector.broadcast %c0_i32_6 : i32 to vector<1x128xi32>
    %25 = arith.cmpi eq, %23, %24 : vector<1x128xi32>
    %c0_7 = arith.constant 0 : index
    %c0_8 = arith.constant 0 : index
    %26 = vector.load %arg4[%c0_7, %c0_8] : memref<16x128xf32, #tpu.memory_space<vmem>>, vector<16x128xf32>
    %c127_i32 = arith.constant 127 : i32
    %27 = tpu.dynamic_rotate %26 by %c127_i32 dim 1 : vector<16x128xf32>, i32 -> vector<16x128xf32>
    %c1_i32_9 = arith.constant 1 : i32
    %28 = tpu.dynamic_rotate %26 by %c1_i32_9 dim 1 : vector<16x128xf32>, i32 -> vector<16x128xf32>
    %29 = vector.shape_cast %25 : vector<1x128xi1> to vector<1x128xi1>
    %30 = vector.broadcast %29 : vector<1x128xi1> to vector<16x128xi1>
    %31 = arith.select %30, %27, %28 : vector<16x128xi1>, vector<16x128xf32>
    %32 = arith.mulf %26, %5 : vector<16x128xf32>
    %33 = arith.mulf %31, %6 : vector<16x128xf32>
    %34 = arith.addf %32, %33 : vector<16x128xf32>
    %c0_10 = arith.constant 0 : index
    %c0_11 = arith.constant 0 : index
    %35 = vector.load %arg5[%c0_10, %c0_11] : memref<16x128xf32, #tpu.memory_space<vmem>>, vector<16x128xf32>
    tpu.vector_store %arg5[%c0_10, %c0_11], %34 {strides = array<i32>} : memref<16x128xf32, #tpu.memory_space<vmem>>, vector<16x128xf32>,
    return
  }
  func.func @transform_0(%arg0: i32, %arg1: i32) -> (i32, i32) {
    %c0_i32 = arith.constant 0 : i32
    %c0_i32_0 = arith.constant 0 : i32
    return %arg0, %c0_i32 : i32, i32
  }
  func.func @transform_1(%arg0: i32, %arg1: i32) -> (i32, i32) {
    %c0_i32 = arith.constant 0 : i32
    %c0_i32_0 = arith.constant 0 : i32
    %c0_i32_1 = arith.constant 0 : i32
    return %c0_i32, %c0_i32_0 : i32, i32
  }
  func.func @transform_2(%arg0: i32, %arg1: i32) -> (i32, i32) {
    %c0_i32 = arith.constant 0 : i32
    return %arg0, %arg1 : i32, i32
  }
  func.func @transform_3(%arg0: i32, %arg1: i32) -> (i32, i32) {
    %c0_i32 = arith.constant 0 : i32
    return %arg0, %arg1 : i32, i32
  }
}

</mosaic_0001>

<bundles_post_ra>
// kernel: tpu_custom_call.1
= control target key start
LH: loop header
LB: loop body
LE: loop exit
PB: predicated region body
PF: predicated region fallthrough
CT: control target
= control target key end

     0   :  { %v573_v2 = vmov 0   ;;  %s574_s16 = smov 127   ;;  %s710_s0 = inlined_call_operand.vmem [shape: f32[16,1], index: 0, kind: input, shape index: {}]   ;;  %s711_s1 = inlined_call_operand.vmem [shape: f32[1,128], index: 1, kind: input, shape index: {}]   ;;  %s712_s2 = inlined_call_operand.vmem [shape: f32[16,128], index: 2, kind: input, shape index: {}]   ;;  %s713_s3 = inlined_call_operand.hbm [shape: f32[16,128], index: 3, kind: output, shape index: {}]  }
   0x1   :  { %v15_v0 = vld [vmem:[%s710_s0] sm:$0xff]  ;;  %540 = vset.pattern.permute.xlu0 %v573_v2  ;;  %v617_v3 = vld [vmem:[%s712_s2 + $0x8] sm:$0xff] }
   0x2   :  { %v611_v1 = vld [vmem:[%s712_s2] sm:$0xff]  ;;  %20 = vperm.xlu0 %540, %v15_v0   ;;  %v16_v4 = vld [vmem:[%s710_s0 + $0x8] sm:$0xff] }
   0x3   :  { %467 = vrot.lane.b32.xlu1 %v611_v1, %s574_s16 }
   0x4   :  { %8 = vsyncpa [#allocation3], 0  ;;  %s575_s21 = smov 1   ;;  %v503_v5 = vld [vmem:[%s711_s1] ss:$0 sm:$0xff]  ;;  %s582_s0 = smov [#allocation2]  }
   0x5   :  { %v576_v26 = vmov 683565275   ;;  %v577_v30 = vmov 2475754826   ;;  %v578_v32 = vmov 2131351028  }
   0x6   :  { %25 = vperm.xlu0 %540, %v16_v4   ;;  %v579_v34 = vmov 2102212464   ;;  %v580_v36 = vmov 920167782   ;;  %v581_v43 = vmov 1326507024  }
   0x7   :  { %469 = vrot.lane.b32.xlu1 %v617_v3, %s574_s16  ;;  %s492_s1 = sshll.u32 %s582_s0, 4  ;;  %s493_s1 = int_to_ptr.vmem [resolvable:$true] %s492_s1 }
   0x8   :  { %s549_s2 = scalar_lea.vmem %s493_s1, 256  ;;  %p554_p1 = scmp.lt.s32.totalorder %s493_s1, %s493_s1 }
   0x9   :  { %p550_p0 = scmp.ne.s32.totalorder %s493_s1, %s549_s2  ;;  %p555_p2 = scmp.lt.s32.totalorder %s549_s2, %s549_s2 }
   0xa   :  { %471 = vrot.lane.b32.xlu0 %v611_v1, %s575_s21 }
   0xb   :  { %473 = vrot.lane.b32.xlu1 %v617_v3, %s575_s21  ;;  %p556_p3 = por %p555_p2, %p554_p1 }
   0xd   :  { %p557_p4 = pnand %p556_p3, %p550_p0 }
  0x81   :  { %v21_v6 = vpop.permute.xlu0 %20 }
  0x82   :  { %v628_v7 = vmul.f32 %v503_v5, %v21_v6 }
  0x84   :  { %v36_v8 = vand.u32 2147483647, %v628_v7  ;;  %v39_v9 = vand.u32 2139095040, %v628_v7  ;;  %vm38_vm14 = vcmp.lt.s32.totalorder %v628_v7, 0 }
  0x85   :  { %v26_v10 = vpop.permute.xlu0 %25 }
  0x86   :  { %v40_v11 = vshrl.u32 %v39_v9, 23  ;;  %v632_v12 = vmul.f32 %v503_v5, %v26_v10  ;;  %v43_v13 = vand.u32 8388607, %v36_v8  ;;  %vm37_vm15 = vcmp.le.f32.partialorder %v36_v8, 0.7853982 }
  0x88   :  { %v504_v14 = vadd.s32 4294967169, %v40_v11  ;;  %v142_v15 = vand.u32 2139095040, %v632_v12  ;;  %v44_v17 = vor.u32 8388608, %v43_v13  ;;  %v139_v19 = vand.u32 2147483647, %v632_v12 }
  0x8a   :  { %v46_v16 = vadd.s32 1, %v504_v14  ;;  %v143_v18 = vshrl.u32 %v142_v15, 23  ;;  %v638_v24 = vshll.u32 %v44_v17, 8  ;;  %v146_v28 = vand.u32 8388607, %v139_v19 }
  0x8c   :  { %vm47_vm0 = vcmp.gt.s32.totalorder %v46_v16, 0  ;;  %v508_v21 = vadd.s32 4294967169, %v143_v18  ;;  %v147_v58 = vor.u32 8388608, %v146_v28 }
  0x8d   :  { %v48_v20 = vsel %vm47_vm0, %v46_v16, 0  ;;  %vm141_vm0 = vcmp.lt.s32.totalorder %v632_v12, 0 }
  0x8e   :  { %v49_v22 = vshrl.u32 %v48_v20, 5  ;;  %v50_v23 = vand.u32 31, %v48_v20  ;;  %v149_v29 = vadd.s32 1, %v508_v21  ;;  %v187_v11 = vshll.u32 %v147_v58, 8 }
  0x90   :  { %v51_v25 = vsub.s32 32, %v50_v23  ;;  %v53_v27 = vshll.u32 %v576_v26, %v50_v23  ;;  %v56_v31 = vshll.u32 %v577_v30, %v50_v23  ;;  %v59_v33 = vshll.u32 %v578_v32, %v50_v23 }
  0x91   :  { %v62_v35 = vshll.u32 %v579_v34, %v50_v23  ;;  %v65_v37 = vshll.u32 %v580_v36, %v50_v23  ;;  %vm68_vm1 = vcmp.lt.s32.totalorder %v49_v22, 1  ;;  %vm70_vm2 = vcmp.lt.s32.totalorder %v49_v22, 3 }
  0x92   :  { %v54_v38 = vshrl.u32 %v577_v30, %v51_v25  ;;  %v57_v39 = vshrl.u32 %v578_v32, %v51_v25  ;;  %v60_v40 = vshrl.u32 %v579_v34, %v51_v25  ;;  %v52_v41 = vshrl.u32 %v576_v26, %v51_v25 }
  0x93   :  { %v63_v42 = vshrl.u32 %v580_v36, %v51_v25  ;;  %v66_v44 = vshrl.u32 %v581_v43, %v51_v25  ;;  %vm150_vm3 = vcmp.gt.s32.totalorder %v149_v29, 0  ;;  %vm71_vm4 = vcmp.lt.s32.totalorder %v49_v22, 4 }
  0x94   :  { %v55_v45 = vor.u32 %v54_v38, %v53_v27  ;;  %v58_v46 = vor.u32 %v57_v39, %v56_v31  ;;  %v61_v47 = vor.u32 %v60_v40, %v59_v33  ;;  %v151_v50 = vsel %vm150_vm3, %v149_v29, 0 }
  0x95   :  { %v64_v48 = vor.u32 %v63_v42, %v62_v35  ;;  %v67_v49 = vor.u32 %v66_v44, %v65_v37  ;;  %vm69_vm5 = vcmp.lt.s32.totalorder %v49_v22, 2  ;;  %v153_v61 = vand.u32 31, %v151_v50 }
  0x96   :  { %v72_v51 = vsel %vm68_vm1, %v52_v41, %v55_v45  ;;  %v73_v52 = vsel %vm71_vm4, %v61_v47, 2102212464  ;;  %v76_v53 = vsel %vm68_vm1, %v55_v45, %v58_v46  ;;  %v80_v54 = vsel %vm68_vm1, %v58_v46, %v61_v47 }
  0x97   :  { %v74_v55 = vsel %vm70_vm2, %v58_v46, %v73_v52  ;;  %v77_v56 = vsel %vm71_vm4, %v64_v48, 920167782  ;;  %v81_v57 = vsel %vm71_vm4, %v67_v49, 1326507024  ;;  %v152_v9 = vshrl.u32 %v151_v50, 5 }
  0x98   :  { %v78_v59 = vsel %vm70_vm2, %v61_v47, %v77_v56  ;;  %v82_v60 = vsel %vm70_vm2, %v64_v48, %v81_v57  ;;  %v75_v62 = vsel %vm69_vm5, %v72_v51, %v74_v55  ;;  %v154_v10 = vsub.s32 32, %v153_v61 }
  0x99   :  { %v79_v63 = vsel %vm69_vm5, %v76_v53, %v78_v59  ;;  %v83_v0 = vsel %vm69_vm5, %v80_v54, %v82_v60  ;;  %v91_v13 = vmul.u32 %v638_v24, %v75_v62  ;;  %v156_v14 = vshll.u32 %v576_v26, %v153_v61 }
  0x9a   :  { %v651_v2 = vmul.u32.u64.low %v638_v24, %v83_v0  ;;  %v652_v4 = vmul.u32.u64.high %v638_v24, %v83_v0, %v651_v2  ;;  %v655_v5 = vmul.u32.u64.low %v638_v24, %v79_v63  ;;  %v656_v6 = vmul.u32.u64.high %v638_v24, %v79_v63, %v655_v5 }
  0x9b   :  { %v159_v15 = vshll.u32 %v577_v30, %v153_v61  ;;  %v162_v16 = vshll.u32 %v578_v32, %v153_v61  ;;  %v157_v17 = vshrl.u32 %v577_v30, %v154_v10  ;;  %v160_v18 = vshrl.u32 %v578_v32, %v154_v10 }
  0x9c   :  { %v163_v20 = vshrl.u32 %v579_v34, %v154_v10  ;;  %v165_v21 = vshll.u32 %v579_v34, %v153_v61  ;;  %vm93_vm6 = vc.u32 %v652_v4, %v655_v5  ;;  %v94_v22 = vadd.s32 1, %v656_v6 }
  0x9d   :  { %v166_v23 = vshrl.u32 %v580_v36, %v154_v10  ;;  %v168_v25 = vshll.u32 %v580_v36, %v153_v61  ;;  %v158_v27 = vor.u32 %v157_v17, %v156_v14  ;;  %v161_v28 = vor.u32 %v160_v18, %v159_v15 }
  0x9e   :  { %v164_v29 = vor.u32 %v163_v20, %v162_v16  ;;  %v169_v31 = vshrl.u32 %v581_v43, %v154_v10  ;;  %v95_v24 = vsel %vm93_vm6, %v94_v22, %v656_v6  ;;  %vm171_vm7 = vcmp.lt.s32.totalorder %v152_v9, 1 }
  0x9f   :  { %v167_v33 = vor.u32 %v166_v23, %v165_v21  ;;  %vm174_vm8 = vcmp.lt.s32.totalorder %v152_v9, 4  ;;  %v96_v30 = vadd.s32 %v95_v24, %v91_v13  ;;  %vm173_vm9 = vcmp.lt.s32.totalorder %v152_v9, 3 }
  0xa0   :  { %v170_v32 = vor.u32 %v169_v31, %v168_v25  ;;  %v176_v34 = vsel %vm174_vm8, %v164_v29, 2102212464  ;;  %v155_v35 = vshrl.u32 %v576_v26, %v154_v10  ;;  %v179_v37 = vsel %vm171_vm7, %v158_v27, %v161_v28 }
  0xa1   :  { %v180_v38 = vsel %vm174_vm8, %v167_v33, 920167782  ;;  %v183_v39 = vsel %vm171_vm7, %v161_v28, %v164_v29  ;;  %v97_v40 = vadd.s32 536870912, %v96_v30  ;;  %vm172_vm10 = vcmp.lt.s32.totalorder %v152_v9, 2 }
  0xa2   :  { %v181_v36 = vsel %vm173_vm9, %v164_v29, %v180_v38  ;;  %v184_v41 = vsel %vm174_vm8, %v170_v32, 1326507024  ;;  %v175_v42 = vsel %vm171_vm7, %v155_v35, %v158_v27  ;;  %v177_v43 = vsel %vm173_vm9, %v161_v28, %v176_v34 }
  0xa3   :  { %v182_v44 = vsel %vm172_vm10, %v179_v37, %v181_v36  ;;  %v185_v45 = vsel %vm173_vm9, %v167_v33, %v184_v41  ;;  %v98_v46 = vshrl.u32 %v97_v40, 30  ;;  %v178_v52 = vsel %vm172_vm10, %v175_v42, %v177_v43 }
  0xa4   :  { %v186_v47 = vsel %vm172_vm10, %v183_v39, %v185_v45  ;;  %v666_v48 = vmul.u32.u64.low %v187_v11, %v182_v44  ;;  %v667_v49 = vmul.u32.u64.high %v187_v11, %v182_v44, %v666_v48  ;;  %v194_v55 = vmul.u32 %v187_v11, %v178_v52 }
  0xa5   :  { %v669_v50 = vmul.u32.u64.low %v187_v11, %v186_v47  ;;  %v670_v51 = vmul.u32.u64.high %v187_v11, %v186_v47, %v669_v50  ;;  %v99_v26 = vshll.u32 %v98_v46, 30  ;;  %v92_v9 = vadd.s32 %v655_v5, %v652_v4 }
  0xa6   :  { %v197_v54 = vadd.s32 1, %v667_v49  ;;  %v122_v31 = vsub.s32 4, %v98_v46  ;;  %v450_v36 = vlaneseq  ;;  %vm140_vm1 = vcmp.le.f32.partialorder %v139_v19, 0.7853982 }
  0xa7   :  { %v100_v53 = vsub.s32 %v96_v30, %v99_v26  ;;  %vm196_vm11 = vc.u32 %v670_v51, %v666_v48  ;;  %v195_v4 = vadd.s32 %v666_v48, %v670_v51  ;;  %vm128_vm9 = vweird.f32 %v628_v7 }
  0xa8   :  { %v198_v57 = vsel %vm196_vm11, %v197_v54, %v667_v49  ;;  %v123_v37 = vsel %vm38_vm14, %v122_v31, %v98_v46  ;;  %v451_v45 = vand.u32 127, %v450_v36 }
  0xa9   :  { %v102_v56 = vsub.s32 0, %v100_v53  ;;  %v199_v58 = vadd.s32 %v198_v57, %v194_v55  ;;  %v125_v42 = vsel %vm37_vm15, 0, %v123_v37 }
  0xaa   :  { %v335_v47 = vadd.s32 3, %v125_v42  ;;  %v129_v51 = vand.u32 3, %v125_v42  ;;  %v456_v8 = vand.u32 1, %v451_v45 }
  0xab   :  { %v505_v59 = vmin.u32 %v102_v56, %v100_v53  ;;  %v200_v60 = vadd.s32 536870912, %v199_v58 }
  0xac   :  { %v336_v46 = vand.u32 3, %v335_v47  ;;  %vm134_vm2 = vcmp.eq.s32.totalorder %v129_v51, 2  ;;  %vm686_vm3 = vcmp.eq.s32.totalorder %v456_v8, 0  ;;  %vm131_vm5 = vcmp.eq.s32.totalorder %v129_v51, 0 }
  0xad   :  { %v104_v61 = vclz %v505_v59  ;;  %v201_v62 = vshrl.u32 %v200_v60, 30  ;;  %vm130_vm7 = vcmp.lt.s32.totalorder %v129_v51, 2 }
  0xae   :  { %vm341_vm4 = vcmp.eq.s32.totalorder %v336_v46, 2  ;;  %vm338_vm6 = vcmp.eq.s32.totalorder %v336_v46, 0  ;;  %vm337_vm8 = vcmp.lt.s32.totalorder %v336_v46, 2 }
  0xaf   :  { %v506_v63 = vadd.s32 4294967294, %v104_v61  ;;  %v202_v0 = vshll.u32 %v201_v62, 30  ;;  %v225_v49 = vsub.s32 4, %v201_v62 }
  0xb1   :  { %vm507_vm12 = vcmp.lt.s32.totalorder %v506_v63, 0  ;;  %v203_v6 = vsub.s32 %v199_v58, %v202_v0  ;;  %v226_v52 = vsel %vm141_vm0, %v225_v49, %v201_v62  ;;  %v468_v58 = vpop.permute.xlu1 %467  ;;  %v472_v62 = vpop.permute.xlu0 %471 }
  0xb2   :  { %v107_v2 = vsel %vm507_vm12, 0, %v506_v63  ;;  %v228_v60 = vsel %vm140_vm1, 0, %v226_v52 }
  0xb3   :  { %v108_v10 = vsub.s32 32, %v107_v2  ;;  %v112_v11 = vsub.s32 4294967266, %v107_v2  ;;  %v205_v13 = vsub.s32 0, %v203_v6  ;;  %v109_v14 = vshll.u32 %v100_v53, %v107_v2 }
  0xb5   :  { %v110_v15 = vshrl.u32 %v92_v9, %v108_v10  ;;  %v113_v16 = vadd.s32 127, %v112_v11  ;;  %v509_v17 = vmin.u32 %v205_v13, %v203_v6  ;;  %v439_v9 = vadd.s32 3, %v228_v60 }
  0xb6   :  { %v477_v13 = vsel %vm686_vm3, %v468_v58, %v472_v62 }
  0xb7   :  { %v111_v18 = vor.u32 %v110_v15, %v109_v14  ;;  %v114_v20 = vshll.u32 %v113_v16, 23  ;;  %v207_v21 = vclz %v509_v17  ;;  %v470_v16 = vpop.permute.xlu1 %469 }
  0xb9   :  { %v115_v22 = vor.u32 4788187, %v114_v20  ;;  %v510_v23 = vadd.s32 4294967294, %v207_v21  ;;  %v118_v27 = vcvt.s32.f32 %v111_v18  ;;  %v232_v18 = vand.u32 3, %v228_v60 }
  0xba   :  { %v440_v20 = vand.u32 3, %v439_v9 }
  0xbb   :  { %v116_v25 = vand.u32 2147483647, %v115_v22  ;;  %vm511_vm13 = vcmp.lt.s32.totalorder %v510_v23, 0  ;;  %vm237_vm10 = vcmp.eq.s32.totalorder %v232_v18, 2  ;;  %vm234_vm12 = vcmp.eq.s32.totalorder %v232_v18, 0 }
  0xbc   :  { %v210_v29 = vsel %vm511_vm13, 0, %v510_v23  ;;  %vm445_vm11 = vcmp.eq.s32.totalorder %v440_v20, 2  ;;  %vm442_vm13 = vcmp.eq.s32.totalorder %v440_v20, 0 }
  0xbd   :  { %v119_v28 = vmul.f32 %v118_v27, %v116_v25  ;;  %v211_v5 = vsub.s32 32, %v210_v29  ;;  %v215_v24 = vsub.s32 4294967266, %v210_v29  ;;  %v212_v30 = vshll.u32 %v203_v6, %v210_v29  ;;  %v474_v25 = vpop.permute.xlu1 %473 }
  0xbf   :  { %v120_v33 = vxor.u32 2147483648, %v119_v28  ;;  %v213_v32 = vshrl.u32 %v195_v4, %v211_v5  ;;  %v216_v34 = vadd.s32 127, %v215_v24 }
  0xc1   :  { %v121_v35 = vsel %vm38_vm14, %v120_v33, %v119_v28  ;;  %v214_v39 = vor.u32 %v213_v32, %v212_v30  ;;  %v217_v40 = vshll.u32 %v216_v34, 23  ;;  %vm233_vm14 = vcmp.lt.s32.totalorder %v232_v18, 2 }
  0xc2   :  { %v124_v38 = vsel %vm37_vm15, %v628_v7, %v121_v35  ;;  %vm441_vm15 = vcmp.lt.s32.totalorder %v440_v20, 2  ;;  %v478_v33 = vsel %vm686_vm3, %v470_v16, %v474_v25 }
  0xc3   :  { %541 = vcosq.f32 %v124_v38  ;;  %v218_v41 = vor.u32 4788187, %v217_v40  ;;  %v221_v44 = vcvt.s32.f32 %v214_v39 }
  0xc4   :  { %543 = vsinq.f32 %v124_v38 }
  0xc5   :  { %v219_v43 = vand.u32 2147483647, %v218_v41 }
  0xc7   :  { %v222_v48 = vmul.f32 %v221_v44, %v219_v43 }
  0xc9   :  { %v223_v50 = vxor.u32 2147483648, %v222_v48 }
  0xcb   :  { %v224_v26 = vsel %vm141_vm0, %v223_v50, %v222_v48  ;;  %vm231_vm0 = vweird.f32 %v632_v12 }
  0xcc   :  { %v227_v54 = vsel %vm140_vm1, %v632_v12, %v224_v26 }
  0xcd   :  { %v542_v53 = vpop.eup %541  ;;  %545 = vcosq.f32 %v227_v54 }
  0xce   :  { %v544_v55 = vpop.eup %543  ;;  %v135_v56 = vxor.u32 2147483648, %v542_v53  ;;  %547 = vsinq.f32 %v227_v54 }
  0xcf   :  { %v132_v59 = vxor.u32 2147483648, %v544_v55 }
  0xd0   :  { %v136_v19 = vsel %vm134_vm2, %v135_v56, %v544_v55  ;;  %v343_v61 = vsel %vm341_vm4, %v135_v56, %v544_v55 }
  0xd1   :  { %v133_v63 = vsel %vm131_vm5, %v542_v53, %v132_v59  ;;  %v340_v0 = vsel %vm338_vm6, %v542_v53, %v132_v59 }
  0xd2   :  { %v137_v2 = vsel %vm130_vm7, %v133_v63, %v136_v19  ;;  %v344_v6 = vsel %vm337_vm8, %v340_v0, %v343_v61 }
  0xd3   :  { %v138_v10 = vsel %vm128_vm9, nan, %v137_v2  ;;  %v345_v11 = vsel %vm128_vm9, nan, %v344_v6 }
  0xd4   :  { %v479_v14 = vmul.f32 %v611_v1, %v138_v10  ;;  %v481_v15 = vmul.f32 %v477_v13, %v345_v11 }
  0xd6   :  { %v483_v17 = vadd.f32 %v481_v15, %v479_v14 }
  0xd7   :  { %v546_v21 = vpop.eup %545 }
  0xd8   :  { %485 = vst [vmem:[#allocation2] sm:$0xff] %v483_v17  ;;  %v548_v22 = vpop.eup %547  ;;  %v238_v23 = vxor.u32 2147483648, %v546_v21 }
  0xd9   :  { %v235_v7 = vxor.u32 2147483648, %v548_v22 }
  0xda   :  { %v239_v27 = vsel %vm237_vm10, %v238_v23, %v548_v22  ;;  %v447_v28 = vsel %vm445_vm11, %v238_v23, %v548_v22 }
  0xdb   :  { %v236_v29 = vsel %vm234_vm12, %v546_v21, %v235_v7  ;;  %v444_v1 = vsel %vm442_vm13, %v546_v21, %v235_v7 }
  0xdc   :  { %v240_v31 = vsel %vm233_vm14, %v236_v29, %v239_v27  ;;  %v448_v4 = vsel %vm441_vm15, %v444_v1, %v447_v28 }
  0xdd   :  { %v241_v5 = vsel %vm231_vm0, nan, %v240_v31  ;;  %v449_v24 = vsel %vm231_vm0, nan, %v448_v4 }
  0xde   :  { %v480_v30 = vmul.f32 %v617_v3, %v241_v5  ;;  %v482_v32 = vmul.f32 %v478_v33, %v449_v24 }
  0xe0   :  { %v484_v34 = vadd.f32 %v482_v32, %v480_v30 }
  0xe2   :  { %486 = vst [vmem:[#allocation2 + $0x8] sm:$0xff] %v484_v34 }
  0xe3   :  { %560 = shalt.err (!%p557_p4)
}
  0xe4   :  { %s561_s26 = scalar_lea.hbm %s713_s3, 256 }
  0xe5   :  { %p562_p5 = scmp.ne.s32.totalorder %s713_s3, %s561_s26  ;;  %p565_p6 = scmp.lt.u32.totalorder %s561_s26, %s713_s3 }
  0xe7   :  { %p567_p7 = pnand %p565_p6, %p562_p5 }
  0xe9   :  { %570 = shalt.err (!%p567_p7)
}
  0xea   :  { %s583_s4 = smov 128   ;;  %s584_s5 = smov 8  }
  0xeb   :  { %498 = dma.vmem_to_hbm [thread:$0]  %s493_s1, 256, %s713_s3, [#allocation3], %s583_s4, %s583_s4, %s584_s5  }
  0xec   :  { %571 = dma.done.wait [#allocation3], 256  }
  0xed   :  { %572 = vsyncadd [#allocation3], 4294967040 }
  0xee   :  { %502 = vsyncpa [#allocation3], 1 }

</bundles_post_ra>
